<compile_context>
chip_gen: v6e
topology: v6e:2x2x1
jax: 0.10.0
libtpu: 0.0.40
codegen_flags: <defaults>
</compile_context>

<pallas_src>
import functools

import jax
import jax.numpy as jnp
from jax.experimental import pallas as pl
from jax.experimental.pallas import tpu as pltpu

BN_EPS = 1e-5


def _fp_kernel_factory(num_layers, use_bf16_mlp):
    """Per-tile kernel. refs = 5 inputs + (3 + 2*(num_layers-1)) params + 1 out."""

    def mlp_mm(w, h):
        # MXU matmul for the MLP; bf16 operands on v6e/v7x halve MXU passes.
        if use_bf16_mlp:
            w = w.astype(jnp.bfloat16)
            h = h.astype(jnp.bfloat16)
        return jnp.dot(w, h, preferred_element_type=jnp.float32)

    def kernel(*refs):
        x1_ref, x2_ref, sq2_ref, p1_ref, p2_ref = refs[:5]
        w1a_ref, w1b_ref, b1_ref = refs[5:8]
        tail = refs[8:8 + 2 * (num_layers - 1)]
        o_ref = refs[8 + 2 * (num_layers - 1)]

        x1 = x1_ref[0]            # [3, TN]  queries (channel-major)
        x2 = x2_ref[0]            # [3, S]   sampled points
        sq2 = sq2_ref[0]          # [S, 1]   |xyz2|^2 (precomputed, tiny)
        p1 = p1_ref[0]            # [D1, TN]
        p2 = p2_ref[0]            # [D2, S]
        TN = x1.shape[1]
        S = x2.shape[1]

        # Squared pairwise distances, oriented [S, TN] (queries on lanes).
        sq1 = jnp.sum(x1 * x1, axis=0, keepdims=True)                     # [1, TN]
        cross = jax.lax.dot_general(                                       # [S, TN]
            x2, x1, (((0,), (0,)), ((), ())),
            preferred_element_type=jnp.float32)
        d = sq2 + sq1 - 2.0 * cross

        # 3 nearest neighbours per query (column) via iterative masked min;
        # build a sparse [S, TN] weight matrix so the gather is a dense matmul.
        sub_ids = jax.lax.broadcasted_iota(jnp.int32, (S, TN), 0)
        wmat = jnp.zeros((S, TN), jnp.float32)
        norm = jnp.zeros((1, TN), jnp.float32)
        for _ in range(3):
            dmin = jnp.min(d, axis=0, keepdims=True)                       # [1, TN]
            amin = jnp.min(jnp.where(d == dmin, sub_ids, S),
                           axis=0, keepdims=True)                          # first argmin
            eq = sub_ids == amin                                           # [S, TN] bool
            recip = 1.0 / (dmin + 1e-8)                                    # [1, TN]
            wmat = jnp.where(eq, recip, wmat)
            norm = norm + recip
            d = jnp.where(eq, jnp.inf, d)

        # Interpolation matmul; normalization deferred past the matmul
        # (mathematically identical, removes an [S, TN] divide).
        interp = jnp.dot(p2, wmat, preferred_element_type=jnp.float32)     # [D2, TN]
        interp = interp * (1.0 / norm)

        # MLP (1x1 conv with eval-mode BN folded).  First layer is split so
        # the concat([points1, interp]) never materializes.
        h = jnp.maximum(
            mlp_mm(w1a_ref[...], p1) + mlp_mm(w1b_ref[...], interp) + b1_ref[...],
            0.0)
        for l in range(num_layers - 1):
            w = tail[2 * l][...]
            b = tail[2 * l + 1][...]
            h = jnp.maximum(mlp_mm(w, h) + b, 0.0)

        o_ref[0] = h.astype(o_ref.dtype)                                   # [Cout, TN]

    return kernel


def init_params(key, in_channel, mlp):
    """Deterministic synthetic params: list of (W[Cout,Cin], b, gamma, beta, mean, var)."""
    params = []
    last = in_channel
    for out_ch in mlp:
        key, k1, k2, k3, k4, k5, k6 = jax.random.split(key, 7)
        bound = 1.0 / jnp.sqrt(jnp.float32(last))
        w = jax.random.uniform(k1, (out_ch, last), jnp.float32, -bound, bound)
        b = jax.random.uniform(k2, (out_ch,), jnp.float32, -bound, bound)
        gamma = jax.random.uniform(k3, (out_ch,), jnp.float32, 0.5, 1.5)
        beta = 0.1 * jax.random.normal(k4, (out_ch,), jnp.float32)
        mean = 0.1 * jax.random.normal(k5, (out_ch,), jnp.float32)
        var = jax.random.uniform(k6, (out_ch,), jnp.float32, 0.5, 1.5)
        params.append((w, b, gamma, beta, mean, var))
        last = out_ch
    return params


def _fold_bn_split(params, d1):
    """Fold eval-mode BN into the 1x1 conv and split layer 0's weight so the
    kernel never concatenates [points1, interp].

    Returns flat list: [W1a[C1,D1], W1b[C1,D2], b1[C1,1], W2, b2, ...]."""
    flat = []
    for i, (w, b, gamma, beta, mean, var) in enumerate(params):
        scale = gamma / jnp.sqrt(var + BN_EPS)              # [Cout]
        w_f = w * scale[:, None]                            # [Cout, Cin]
        b_f = ((b - mean) * scale + beta).reshape(-1, 1)    # [Cout, 1]
        if i == 0:
            flat.extend([w_f[:, :d1], w_f[:, d1:], b_f])
        else:
            flat.extend([w_f, b_f])
    return flat


def _pick_tile(n):
    """Tile for the query dimension (lanes)."""
    if n <= 512:
        return n
    for t in (512, 256, 128):
        if n % t == 0:
            return t
    # TODO(synk): pad ragged large N to a multiple of 128 instead of one big tile.
    return n


@functools.partial(jax.jit, static_argnames=("use_bf16_mlp",))
def pointnet_fp_forward(xyz1, xyz2, points1, points2, folded_params,
                        use_bf16_mlp=False):
    """Inputs/outputs in the PyTorch NCL layout; no host-side transposes."""
    B, _, N = xyz1.shape
    S = xyz2.shape[2]
    D1 = points1.shape[1]
    D2 = points2.shape[1]
    num_layers = (len(folded_params) - 1) // 2
    c_out = folded_params[-1].shape[0]

    # TODO(synk): S == 1 / points1 is None branches not implemented.
    assert S > 3, "kernel requires S > 3 (3-NN selection)"

    x1 = xyz1.astype(jnp.float32)
    x2 = xyz2.astype(jnp.float32)
    p1 = points1.astype(jnp.float32)
    p2 = points2.astype(jnp.float32)
    # |xyz2|^2 as a [B, S, 1] column so the kernel never relayouts lanes->sublanes.
    sq2 = jnp.sum(x2 * x2, axis=1)[:, :, None]

    tn = _pick_tile(N)

    in_specs = [
        pl.BlockSpec((1, 3, tn), lambda b, n: (b, 0, n)),
        pl.BlockSpec((1, 3, S), lambda b, n: (b, 0, 0)),
        pl.BlockSpec((1, S, 1), lambda b, n: (b, 0, 0)),
        pl.BlockSpec((1, D1, tn), lambda b, n: (b, 0, n)),
        pl.BlockSpec((1, D2, S), lambda b, n: (b, 0, 0)),
    ]
    for p in folded_params:
        # Default-arg binding (nd=p.ndim) fixes the late-binding lambda bug.
        in_specs.append(pl.BlockSpec(p.shape, lambda b, n, nd=p.ndim: (0,) * nd))

    out = pl.pallas_call(
        _fp_kernel_factory(num_layers, use_bf16_mlp),
        out_shape=jax.ShapeDtypeStruct((B, c_out, N), jnp.float32),
        grid_spec=pltpu.PrefetchScalarGridSpec(
            num_scalar_prefetch=0,
            grid=(B, N // tn),
            in_specs=in_specs,
            out_specs=pl.BlockSpec((1, c_out, tn), lambda b, n: (b, 0, n)),
        ),
        compiler_params=pltpu.CompilerParams(
            dimension_semantics=("parallel", "parallel"),
            vmem_limit_bytes=48 * 1024 * 1024,
        ),
    )(x1, x2, sq2, p1, p2, *folded_params)

    return out  # [B, Cout, N] — lane-dense, no output transpose needed


def reference_forward(xyz1, xyz2, points1, points2, params):
    """Pure-JAX mirror of the PyTorch forward (eval-mode BN) for checking."""
    x1 = jnp.transpose(xyz1, (0, 2, 1))
    x2 = jnp.transpose(xyz2, (0, 2, 1))
    p2 = jnp.transpose(points2, (0, 2, 1))
    dists = (jnp.sum(x1 ** 2, -1)[:, :, None] + jnp.sum(x2 ** 2, -1)[:, None, :]
             - 2.0 * jnp.einsum('bnc,bmc->bnm', x1, x2))
    idx = jnp.argsort(dists, axis=-1)[:, :, :3]
    d3 = jnp.take_along_axis(dists, idx, axis=-1)
    recip = 1.0 / (d3 + 1e-8)
    w = recip / jnp.sum(recip, -1, keepdims=True)
    gathered = jax.vmap(lambda pts, ix: pts[ix])(p2, idx)           # [B, N, 3, D2]
    interp = jnp.sum(gathered * w[..., None], axis=2)
    p1 = jnp.transpose(points1, (0, 2, 1))
    h = jnp.concatenate([p1, interp], axis=-1)
    for (wc, bc, gamma, beta, mean, var) in params:
        y = jnp.einsum('bnc,oc->bno', h, wc) + bc
        y = (y - mean) / jnp.sqrt(var + BN_EPS) * gamma + beta
        h = jnp.maximum(y, 0.0)
    return jnp.transpose(h, (0, 2, 1))


if __name__ == "__main__":
    B, N, S, D1, D2 = 2, 16, 8, 4, 6
    mlp = [32, 16]
    in_channel = D1 + D2

    key = jax.random.PRNGKey(0)
    k_x1, k_x2, k_p1, k_p2, k_par = jax.random.split(key, 5)
    xyz1 = jax.random.normal(k_x1, (B, 3, N), jnp.float32)
    xyz2 = jax.random.normal(k_x2, (B, 3, S), jnp.float32)
    points1 = jax.random.normal(k_p1, (B, D1, N), jnp.float32)
    points2 = jax.random.normal(k_p2, (B, D2, S), jnp.float32)

    params = init_params(k_par, in_channel, mlp)
    folded = tuple(_fold_bn_split(params, D1))

    # f32 path (reference-accurate).
    out = pointnet_fp_forward(xyz1, xyz2, points1, points2, folded)
    out = jax.block_until_ready(out)

    ref = reference_forward(xyz1, xyz2, points1, points2, params)
    assert out.shape == (B, mlp[-1], N), out.shape
    max_err = float(jnp.max(jnp.abs(out - ref)))
    assert max_err < 1e-4, f"f32 path max abs error {max_err}"

    # bf16 MXU path for the MLP matmuls (v6e/v7x optimization), looser tolerance.
    out_bf16 = jax.block_until_ready(
        pointnet_fp_forward(xyz1, xyz2, points1, points2, folded,
                            use_bf16_mlp=True))
    max_err_bf16 = float(jnp.max(jnp.abs(out_bf16 - ref)))
    assert max_err_bf16 < 1e-1, f"bf16 path max abs error {max_err_bf16}"

    print("KERNEL_OK")
</pallas_src>

<mosaic_0001>
module attributes {stable_mosaic.version = 11 : i64} {
  func.func @kernel(%arg0: i32, %arg1: i32, %arg2: memref<1x3x16xf32, #tpu.memory_space<vmem>>, %arg3: memref<1x3x8xf32, #tpu.memory_space<vmem>>, %arg4: memref<1x8x1xf32, #tpu.memory_space<vmem>>, %arg5: memref<1x4x16xf32, #tpu.memory_space<vmem>>, %arg6: memref<1x6x8xf32, #tpu.memory_space<vmem>>, %arg7: memref<32x4xf32, #tpu.memory_space<vmem>>, %arg8: memref<32x6xf32, #tpu.memory_space<vmem>>, %arg9: memref<32x1xf32, #tpu.memory_space<vmem>>, %arg10: memref<16x32xf32, #tpu.memory_space<vmem>>, %arg11: memref<16x1xf32, #tpu.memory_space<vmem>>, %arg12: memref<1x16x16xf32, #tpu.memory_space<vmem>>) attributes {dimension_semantics = [#tpu.dimension_semantics<parallel>, #tpu.dimension_semantics<parallel>], iteration_bounds = array<i64: 2, 1>, scalar_prefetch = 0 : i64, scratch_operands = 0 : i64, tpu.core_type = #tpu.core_type<tc>, window_params = [{transform_indices = @transform_0, window_bounds = array<i64: 1, 3, 16>}, {transform_indices = @transform_1, window_bounds = array<i64: 1, 3, 8>}, {transform_indices = @transform_2, window_bounds = array<i64: 1, 8, 1>}, {transform_indices = @transform_3, window_bounds = array<i64: 1, 4, 16>}, {transform_indices = @transform_4, window_bounds = array<i64: 1, 6, 8>}, {pipeline_mode = #tpu.pipeline_mode<synchronous>, transform_indices = @transform_5, window_bounds = array<i64: 32, 4>}, {pipeline_mode = #tpu.pipeline_mode<synchronous>, transform_indices = @transform_6, window_bounds = array<i64: 32, 6>}, {pipeline_mode = #tpu.pipeline_mode<synchronous>, transform_indices = @transform_7, window_bounds = array<i64: 32, 1>}, {pipeline_mode = #tpu.pipeline_mode<synchronous>, transform_indices = @transform_8, window_bounds = array<i64: 16, 32>}, {pipeline_mode = #tpu.pipeline_mode<synchronous>, transform_indices = @transform_9, window_bounds = array<i64: 16, 1>}, {transform_indices = @transform_10, window_bounds = array<i64: 1, 16, 16>}]} {
    %c0 = arith.constant 0 : index
    %c0_0 = arith.constant 0 : index
    %c0_1 = arith.constant 0 : index
    %0 = vector.load %arg2[%c0, %c0_0, %c0_1] : memref<1x3x16xf32, #tpu.memory_space<vmem>>, vector<1x3x16xf32>
    %1 = vector.shape_cast %0 : vector<1x3x16xf32> to vector<3x16xf32>
    %c0_2 = arith.constant 0 : index
    %c0_3 = arith.constant 0 : index
    %c0_4 = arith.constant 0 : index
    %2 = vector.load %arg3[%c0_2, %c0_3, %c0_4] : memref<1x3x8xf32, #tpu.memory_space<vmem>>, vector<1x3x8xf32>
    %3 = vector.shape_cast %2 : vector<1x3x8xf32> to vector<3x8xf32>
    %c0_5 = arith.constant 0 : index
    %c0_6 = arith.constant 0 : index
    %c0_7 = arith.constant 0 : index
    %4 = vector.load %arg4[%c0_5, %c0_6, %c0_7] : memref<1x8x1xf32, #tpu.memory_space<vmem>>, vector<1x8x1xf32>
    %5 = vector.shape_cast %4 : vector<1x8x1xf32> to vector<8x1xf32>
    %c0_8 = arith.constant 0 : index
    %c0_9 = arith.constant 0 : index
    %c0_10 = arith.constant 0 : index
    %6 = vector.load %arg5[%c0_8, %c0_9, %c0_10] : memref<1x4x16xf32, #tpu.memory_space<vmem>>, vector<1x4x16xf32>
    %7 = vector.shape_cast %6 : vector<1x4x16xf32> to vector<4x16xf32>
    %c0_11 = arith.constant 0 : index
    %c0_12 = arith.constant 0 : index
    %c0_13 = arith.constant 0 : index
    %8 = vector.load %arg6[%c0_11, %c0_12, %c0_13] : memref<1x6x8xf32, #tpu.memory_space<vmem>>, vector<1x6x8xf32>
    %9 = vector.shape_cast %8 : vector<1x6x8xf32> to vector<6x8xf32>
    %10 = arith.mulf %1, %1 : vector<3x16xf32>
    %cst = arith.constant dense<0.000000e+00> : vector<16xf32>
    %11 = vector.multi_reduction <add>, %10, %cst [0] : vector<3x16xf32> to vector<16xf32>
    %12 = vector.shape_cast %11 : vector<16xf32> to vector<1x16xf32>
    %cst_14 = arith.constant dense<0.000000e+00> : vector<8x16xf32>
    %13 = tpu.matmul %3, %1, %cst_14 {dimension_numbers = #tpu.dot_dimension_numbers<[0], [0], [1], [1], [0, 1, 1, 1], [], []>} : vector<3x8xf32>, vector<3x16xf32>, vector<8x16xf32> -> vector<8x16xf32>
    %14 = vector.broadcast %5 : vector<8x1xf32> to vector<8x16xf32>
    %15 = vector.broadcast %12 : vector<1x16xf32> to vector<8x16xf32>
    %16 = arith.addf %14, %15 : vector<8x16xf32>
    %cst_15 = arith.constant 2.000000e+00 : f32
    %17 = vector.broadcast %cst_15 : f32 to vector<8x16xf32>
    %18 = arith.mulf %17, %13 : vector<8x16xf32>
    %19 = arith.subf %16, %18 : vector<8x16xf32>
    %20 = tpu.iota {dimensions = array<i32: 0>} : vector<8x16xi32>
    %cst_16 = arith.constant 0.000000e+00 : f32
    %21 = vector.broadcast %cst_16 : f32 to vector<8x16xf32>
    %cst_17 = arith.constant 0.000000e+00 : f32
    %22 = vector.broadcast %cst_17 : f32 to vector<1x16xf32>
    %cst_18 = arith.constant dense<0x7F800000> : vector<16xf32>
    %23 = vector.multi_reduction <minimumf>, %19, %cst_18 [0] : vector<8x16xf32> to vector<16xf32>
    %24 = vector.shape_cast %23 : vector<16xf32> to vector<1x16xf32>
    %25 = vector.broadcast %24 : vector<1x16xf32> to vector<8x16xf32>
    %26 = arith.cmpf oeq, %19, %25 : vector<8x16xf32>
    %c8_i32 = arith.constant 8 : i32
    %27 = vector.broadcast %c8_i32 : i32 to vector<8x16xi32>
    %28 = arith.select %26, %20, %27 : vector<8x16xi1>, vector<8x16xi32>
    %cst_19 = arith.constant dense<2147483647> : vector<16xi32>
    %29 = vector.multi_reduction <minsi>, %28, %cst_19 [0] : vector<8x16xi32> to vector<16xi32>
    %30 = vector.shape_cast %29 : vector<16xi32> to vector<1x16xi32>
    %31 = vector.broadcast %30 : vector<1x16xi32> to vector<8x16xi32>
    %32 = arith.cmpi eq, %20, %31 : vector<8x16xi32>
    %cst_20 = arith.constant 9.99999993E-9 : f32
    %33 = vector.broadcast %cst_20 : f32 to vector<1x16xf32>
    %34 = arith.addf %24, %33 : vector<1x16xf32>
    %cst_21 = arith.constant 1.000000e+00 : f32
    %35 = vector.broadcast %cst_21 : f32 to vector<1x16xf32>
    %36 = arith.divf %35, %34 : vector<1x16xf32>
    %37 = vector.shape_cast %36 : vector<1x16xf32> to vector<1x16xf32>
    %38 = vector.broadcast %37 : vector<1x16xf32> to vector<8x16xf32>
    %39 = arith.select %32, %38, %21 : vector<8x16xi1>, vector<8x16xf32>
    %40 = arith.addf %22, %36 : vector<1x16xf32>
    %cst_22 = arith.constant 0x7F800000 : f32
    %41 = vector.broadcast %cst_22 : f32 to vector<8x16xf32>
    %42 = arith.select %32, %41, %19 : vector<8x16xi1>, vector<8x16xf32>
    %cst_23 = arith.constant dense<0x7F800000> : vector<16xf32>
    %43 = vector.multi_reduction <minimumf>, %42, %cst_23 [0] : vector<8x16xf32> to vector<16xf32>
    %44 = vector.shape_cast %43 : vector<16xf32> to vector<1x16xf32>
    %45 = vector.broadcast %44 : vector<1x16xf32> to vector<8x16xf32>
    %46 = arith.cmpf oeq, %42, %45 : vector<8x16xf32>
    %c8_i32_24 = arith.constant 8 : i32
    %47 = vector.broadcast %c8_i32_24 : i32 to vector<8x16xi32>
    %48 = arith.select %46, %20, %47 : vector<8x16xi1>, vector<8x16xi32>
    %cst_25 = arith.constant dense<2147483647> : vector<16xi32>
    %49 = vector.multi_reduction <minsi>, %48, %cst_25 [0] : vector<8x16xi32> to vector<16xi32>
    %50 = vector.shape_cast %49 : vector<16xi32> to vector<1x16xi32>
    %51 = vector.broadcast %50 : vector<1x16xi32> to vector<8x16xi32>
    %52 = arith.cmpi eq, %20, %51 : vector<8x16xi32>
    %cst_26 = arith.constant 9.99999993E-9 : f32
    %53 = vector.broadcast %cst_26 : f32 to vector<1x16xf32>
    %54 = arith.addf %44, %53 : vector<1x16xf32>
    %cst_27 = arith.constant 1.000000e+00 : f32
    %55 = vector.broadcast %cst_27 : f32 to vector<1x16xf32>
    %56 = arith.divf %55, %54 : vector<1x16xf32>
    %57 = vector.shape_cast %56 : vector<1x16xf32> to vector<1x16xf32>
    %58 = vector.broadcast %57 : vector<1x16xf32> to vector<8x16xf32>
    %59 = arith.select %52, %58, %39 : vector<8x16xi1>, vector<8x16xf32>
    %60 = arith.addf %40, %56 : vector<1x16xf32>
    %cst_28 = arith.constant 0x7F800000 : f32
    %61 = vector.broadcast %cst_28 : f32 to vector<8x16xf32>
    %62 = arith.select %52, %61, %42 : vector<8x16xi1>, vector<8x16xf32>
    %cst_29 = arith.constant dense<0x7F800000> : vector<16xf32>
    %63 = vector.multi_reduction <minimumf>, %62, %cst_29 [0] : vector<8x16xf32> to vector<16xf32>
    %64 = vector.shape_cast %63 : vector<16xf32> to vector<1x16xf32>
    %65 = vector.broadcast %64 : vector<1x16xf32> to vector<8x16xf32>
    %66 = arith.cmpf oeq, %62, %65 : vector<8x16xf32>
    %c8_i32_30 = arith.constant 8 : i32
    %67 = vector.broadcast %c8_i32_30 : i32 to vector<8x16xi32>
    %68 = arith.select %66, %20, %67 : vector<8x16xi1>, vector<8x16xi32>
    %cst_31 = arith.constant dense<2147483647> : vector<16xi32>
    %69 = vector.multi_reduction <minsi>, %68, %cst_31 [0] : vector<8x16xi32> to vector<16xi32>
    %70 = vector.shape_cast %69 : vector<16xi32> to vector<1x16xi32>
    %71 = vector.broadcast %70 : vector<1x16xi32> to vector<8x16xi32>
    %72 = arith.cmpi eq, %20, %71 : vector<8x16xi32>
    %cst_32 = arith.constant 9.99999993E-9 : f32
    %73 = vector.broadcast %cst_32 : f32 to vector<1x16xf32>
    %74 = arith.addf %64, %73 : vector<1x16xf32>
    %cst_33 = arith.constant 1.000000e+00 : f32
    %75 = vector.broadcast %cst_33 : f32 to vector<1x16xf32>
    %76 = arith.divf %75, %74 : vector<1x16xf32>
    %77 = vector.shape_cast %76 : vector<1x16xf32> to vector<1x16xf32>
    %78 = vector.broadcast %77 : vector<1x16xf32> to vector<8x16xf32>
    %79 = arith.select %72, %78, %59 : vector<8x16xi1>, vector<8x16xf32>
    %80 = arith.addf %60, %76 : vector<1x16xf32>
    %cst_34 = arith.constant dense<0.000000e+00> : vector<6x16xf32>
    %81 = tpu.matmul %9, %79, %cst_34 {dimension_numbers = #tpu.dot_dimension_numbers<[1], [0], [0], [1], [0, 0, 1, 1], [], []>} : vector<6x8xf32>, vector<8x16xf32>, vector<6x16xf32> -> vector<6x16xf32>
    %cst_35 = arith.constant 1.000000e+00 : f32
    %82 = vector.broadcast %cst_35 : f32 to vector<1x16xf32>
    %83 = arith.divf %82, %80 : vector<1x16xf32>
    %84 = vector.broadcast %83 : vector<1x16xf32> to vector<6x16xf32>
    %85 = arith.mulf %81, %84 : vector<6x16xf32>
    %c0_36 = arith.constant 0 : index
    %c0_37 = arith.constant 0 : index
    %86 = vector.load %arg7[%c0_36, %c0_37] : memref<32x4xf32, #tpu.memory_space<vmem>>, vector<32x4xf32>
    %cst_38 = arith.constant dense<0.000000e+00> : vector<32x16xf32>
    %87 = tpu.matmul %86, %7, %cst_38 {dimension_numbers = #tpu.dot_dimension_numbers<[1], [0], [0], [1], [0, 0, 1, 1], [], []>} : vector<32x4xf32>, vector<4x16xf32>, vector<32x16xf32> -> vector<32x16xf32>
    %c0_39 = arith.constant 0 : index
    %c0_40 = arith.constant 0 : index
    %88 = vector.load %arg8[%c0_39, %c0_40] : memref<32x6xf32, #tpu.memory_space<vmem>>, vector<32x6xf32>
    %cst_41 = arith.constant dense<0.000000e+00> : vector<32x16xf32>
    %89 = tpu.matmul %88, %85, %cst_41 {dimension_numbers = #tpu.dot_dimension_numbers<[1], [0], [0], [1], [0, 0, 1, 1], [], []>} : vector<32x6xf32>, vector<6x16xf32>, vector<32x16xf32> -> vector<32x16xf32>
    %90 = arith.addf %87, %89 : vector<32x16xf32>
    %c0_42 = arith.constant 0 : index
    %c0_43 = arith.constant 0 : index
    %91 = vector.load %arg9[%c0_42, %c0_43] : memref<32x1xf32, #tpu.memory_space<vmem>>, vector<32x1xf32>
    %92 = vector.broadcast %91 : vector<32x1xf32> to vector<32x16xf32>
    %93 = arith.addf %90, %92 : vector<32x16xf32>
    %cst_44 = arith.constant 0.000000e+00 : f32
    %94 = vector.broadcast %cst_44 : f32 to vector<32x16xf32>
    %95 = arith.maximumf %93, %94 : vector<32x16xf32>
    %c0_45 = arith.constant 0 : index
    %c0_46 = arith.constant 0 : index
    %96 = vector.load %arg10[%c0_45, %c0_46] : memref<16x32xf32, #tpu.memory_space<vmem>>, vector<16x32xf32>
    %c0_47 = arith.constant 0 : index
    %c0_48 = arith.constant 0 : index
    %97 = vector.load %arg11[%c0_47, %c0_48] : memref<16x1xf32, #tpu.memory_space<vmem>>, vector<16x1xf32>
    %cst_49 = arith.constant dense<0.000000e+00> : vector<16x16xf32>
    %98 = tpu.matmul %96, %95, %cst_49 {dimension_numbers = #tpu.dot_dimension_numbers<[1], [0], [0], [1], [0, 0, 1, 1], [], []>} : vector<16x32xf32>, vector<32x16xf32>, vector<16x16xf32> -> vector<16x16xf32>
    %99 = vector.broadcast %97 : vector<16x1xf32> to vector<16x16xf32>
    %100 = arith.addf %98, %99 : vector<16x16xf32>
    %cst_50 = arith.constant 0.000000e+00 : f32
    %101 = vector.broadcast %cst_50 : f32 to vector<16x16xf32>
    %102 = arith.maximumf %100, %101 : vector<16x16xf32>
    %c0_51 = arith.constant 0 : index
    %c0_52 = arith.constant 0 : index
    %c0_53 = arith.constant 0 : index
    %103 = vector.load %arg12[%c0_51, %c0_52, %c0_53] : memref<1x16x16xf32, #tpu.memory_space<vmem>>, vector<1x16x16xf32>
    %104 = vector.shape_cast %103 : vector<1x16x16xf32> to vector<16x16xf32>
    %105 = vector.shape_cast %102 : vector<16x16xf32> to vector<1x16x16xf32>
    tpu.vector_store %arg12[%c0_51, %c0_52, %c0_53], %105 {strides = array<i32>} : memref<1x16x16xf32, #tpu.memory_space<vmem>>, vector<1x16x16xf32>,
    return
  }
  func.func @transform_0(%arg0: i32, %arg1: i32) -> (i32, i32, i32) {
    %c0_i32 = arith.constant 0 : i32
    %c0_i32_0 = arith.constant 0 : i32
    return %arg0, %c0_i32, %arg1 : i32, i32, i32
  }
  func.func @transform_1(%arg0: i32, %arg1: i32) -> (i32, i32, i32) {
    %c0_i32 = arith.constant 0 : i32
    %c0_i32_0 = arith.constant 0 : i32
    %c0_i32_1 = arith.constant 0 : i32
    return %arg0, %c0_i32, %c0_i32_0 : i32, i32, i32
  }
  func.func @transform_2(%arg0: i32, %arg1: i32) -> (i32, i32, i32) {
    %c0_i32 = arith.constant 0 : i32
    %c0_i32_0 = arith.constant 0 : i32
    %c0_i32_1 = arith.constant 0 : i32
    return %arg0, %c0_i32, %c0_i32_0 : i32, i32, i32
  }
  func.func @transform_3(%arg0: i32, %arg1: i32) -> (i32, i32, i32) {
    %c0_i32 = arith.constant 0 : i32
    %c0_i32_0 = arith.constant 0 : i32
    return %arg0, %c0_i32, %arg1 : i32, i32, i32
  }
  func.func @transform_4(%arg0: i32, %arg1: i32) -> (i32, i32, i32) {
    %c0_i32 = arith.constant 0 : i32
    %c0_i32_0 = arith.constant 0 : i32
    %c0_i32_1 = arith.constant 0 : i32
    return %arg0, %c0_i32, %c0_i32_0 : i32, i32, i32
  }
  func.func @transform_5(%arg0: i32, %arg1: i32) -> (i32, i32) {
    %c0_i32 = arith.constant 0 : i32
    %c0_i32_0 = arith.constant 0 : i32
    %c0_i32_1 = arith.constant 0 : i32
    return %c0_i32, %c0_i32_0 : i32, i32
  }
  func.func @transform_6(%arg0: i32, %arg1: i32) -> (i32, i32) {
    %c0_i32 = arith.constant 0 : i32
    %c0_i32_0 = arith.constant 0 : i32
    %c0_i32_1 = arith.constant 0 : i32
    return %c0_i32, %c0_i32_0 : i32, i32
  }
  func.func @transform_7(%arg0: i32, %arg1: i32) -> (i32, i32) {
    %c0_i32 = arith.constant 0 : i32
    %c0_i32_0 = arith.constant 0 : i32
    %c0_i32_1 = arith.constant 0 : i32
    return %c0_i32, %c0_i32_0 : i32, i32
  }
  func.func @transform_8(%arg0: i32, %arg1: i32) -> (i32, i32) {
    %c0_i32 = arith.constant 0 : i32
    %c0_i32_0 = arith.constant 0 : i32
    %c0_i32_1 = arith.constant 0 : i32
    return %c0_i32, %c0_i32_0 : i32, i32
  }
  func.func @transform_9(%arg0: i32, %arg1: i32) -> (i32, i32) {
    %c0_i32 = arith.constant 0 : i32
    %c0_i32_0 = arith.constant 0 : i32
    %c0_i32_1 = arith.constant 0 : i32
    return %c0_i32, %c0_i32_0 : i32, i32
  }
  func.func @transform_10(%arg0: i32, %arg1: i32) -> (i32, i32, i32) {
    %c0_i32 = arith.constant 0 : i32
    %c0_i32_0 = arith.constant 0 : i32
    return %arg0, %c0_i32, %arg1 : i32, i32, i32
  }
}

</mosaic_0001>

<bundles_post_ra>
// kernel: pointnet_fp_forward.1
= control target key start
LH: loop header
LB: loop body
LE: loop exit
PB: predicated region body
PF: predicated region fallthrough
CT: control target
= control target key end

     0   :  { %15 = vsyncpa [#allocation3], 0  ;;  %s1748_s0 = inlined_call_operand.vmem [shape: f32[2,3,16], index: 0, kind: input, shape index: {}]   ;;  %s1749_s1 = inlined_call_operand.vmem [shape: f32[2,3,8], index: 1, kind: input, shape index: {}]   ;;  %s1750_s2 = inlined_call_operand.vmem [shape: f32[2,8,1], index: 2, kind: input, shape index: {}]   ;;  %s1751_s3 = inlined_call_operand.vmem [shape: f32[2,4,16], index: 3, kind: input, shape index: {}]   ;;  %s1752_s4 = inlined_call_operand.vmem [shape: f32[2,6,8], index: 4, kind: input, shape index: {}]   ;;  %s1753_s5 = inlined_call_operand.vmem [shape: f32[32,4], index: 5, kind: input, shape index: {}]   ;;  %s1754_s6 = inlined_call_operand.vmem [shape: f32[32,6], index: 6, kind: input, shape index: {}]   ;;  %s1755_s7 = inlined_call_operand.vmem [shape: f32[32,1], index: 7, kind: input, shape index: {}]   ;;  %s1756_s8 = inlined_call_operand.vmem [shape: f32[16,32], index: 8, kind: input, shape index: {}]   ;;  %s1757_s9 = inlined_call_operand.vmem [shape: f32[16,1], index: 9, kind: input, shape index: {}]   ;;  %s1758_s10 = inlined_call_operand.hbm [shape: f32[2,16,16], index: 10, kind: output, shape index: {}]  }
   0x1   :  { %17 = vsyncpa [#allocation3 + $0x1], 0  ;;  %s1531_s13 = smov 0   ;;  %s1533_s14 = smov 0  }
   0x2   :  { %s1535_s15 = smov 0   ;;  %s1537_s16 = smov 0  }
   0x3   :  { %s1539_s17 = smov 0   ;;  %s1541_s18 = smov 0  }
   0x4 LB: > { %1761 = sst [smem:[#allocation5_spill]] %s1464_s17  ;;  %s1233_s19 = sadd.s32 4294967295, %s1468_s18   ;;  %s1468_s18 = sphi %s1541_s18, %s23_s18   ;;  %s1464_s17 = sphi %s1539_s17, %s1766_s17   ;;  %s1460_s16 = sphi %s1537_s16, %s1765_s16   ;;  %s1456_s15 = sphi %s1535_s15, %s1769_s15   ;;  %s1452_s14 = sphi %s1533_s14, %s1768_s14   ;;  %s1448_s13 = sphi %s1531_s13, %s1767_s13  }
   0x5   : > { %s1234_s20 = sadd.s32 4294967294, %s1468_s18   ;;  %s35_s21 = sadd.s32 1, %s1464_s17 }
   0x6   : > { %s283_s22 = sadd.s32 1, %s1456_s15  ;;  %p37_p0 = scmp.ge.s32.totalorder %s35_s21, 2 }
   0x7   : > { %p293_p1 = scmp.ne.s32.totalorder %s1456_s15, %s1452_s14  ;;  %p294_p2 = scmp.eq.s32.totalorder %s1233_s19, 1 }
   0x8   : > { %p299_p3 = scmp.ne.s32.totalorder %s1452_s14, %s1448_s13  ;;  %s1771_s21 = smov (%p37_p0, %s35_s21), 0 }
   0x9   : > { %1762 = sst [smem:[#allocation6_spill]] %s1771_s21  ;;  %p1571_p4 = por %p294_p2, %p293_p1 }
   0xa   : > { %p300_p5 = scmp.eq.s32.totalorder %s1234_s20, 1  ;;  %s278_s24 = ssub.s32 %s1464_s17, %s1771_s21 }
   0xb   : > { %p1237_p6 = scmp.ge.s32.totalorder %s1468_s18, 1  ;;  %p281_p7 = scmp.eq.s32.totalorder %s278_s24, 0 }
   0xc   : > { %p1578_p8 = por %p300_p5, %p299_p3  ;;  %p374_p9 = scmp.lt.s32.totalorder %s1468_s18, 3 }
   0xd   : > { %s1584_s26 = scalar_select %p281_p7, %s1456_s15, %s283_s22  }
   0xe   : > { %p375_p10 = pnand %p1237_p6, %p374_p9 }
   0xf   : > { %p433_p11 = scmp.lt.s32.totalorder (!%p375_p10), %s1460_s16, 1  ;;  %s1264_s12 = sshll.u32 (!%p375_p10), %s1460_s16, 8 }
  0x10   : > { %378 = sbr.rel (%p375_p10) target bundleno = 1060 (0x424), region = 60 }
  0x15   : > { %v1470_v0 = vmov 0.0   ;;  %vm1471_vm0 = vmmov 0   ;;  %s1588_s27 = scalar_select %p433_p11, %s1460_s16, 1  ;;  %vm509_vm1 = vcmask 1042432   ;;  %v1472_v1 = vmov 0  }
  0x16   : > { %1285 = vmatprep.subr.mxu0 %v1470_v0  ;;  %1287 = vmatprep.mubr.msk.f32.mxu0 %vm1471_vm0, %v1470_v0  ;;  %vm505_vm2 = vcmask 23552   ;;  %vm465_vm3 = vcmask 124928   ;;  %vm593_vm4 = vcmask 130048   ;;  %v591_v24 = vlaneseq }
  0x17   : > { %1290 = vmatprep.subr.mxu1 %v1470_v0  ;;  %1292 = vmatprep.mubr.msk.f32.mxu1 %vm1471_vm0, %v1470_v0  ;;  %s1591_s28 = sshll.u32 %s1588_s27, 2  ;;  %s1241_s22 = sshll.u32 %s1588_s27, 3 }
  0x18   : > { %s443_s11 = scalar_lea.vmem %s1749_s1, %s1591_s28  ;;  %s439_s20 = scalar_lea.vmem %s1748_s0, %s1591_s28  ;;  %1383 = vset.pattern.permute.xlu1 %v1472_v1  ;;  %v1608_v27 = vshrl.u32 %v591_v24, 7  ;;  %v962_v24 = vld [vmem:[%s1755_s7 + $0x10] sm:$0xff] }
  0x19   : > { %v460_v2 = vld [vmem:[%s443_s11] sm:$0x7]  ;;  %s447_s17 = scalar_lea.vmem %s1750_s2, %s1241_s22  ;;  %s458_s29 = scalar_lea.vmem %s1752_s4, %s1241_s22 }
  0x1a   : > { %v459_v3 = vld [vmem:[%s439_s20] sm:$0x7]  ;;  %473 = vxpose.xlu0.b32.start.end [1/1] (short) (narrow) %v460_v2, 8  ;;  %s454_s11 = scalar_lea.vmem %s1751_s3, %s1591_s28  ;;  %s1699_s22 = scalar_lea.hbm %s1758_s10, %s1264_s12 }
  0x1b   : > { %1286 = vmatpush3.msk.msra.mxu0 %vm509_vm1, %v459_v3  ;;  %v461_v4 = vld [vmem:[%s447_s17] sm:$0xff]  ;;  %v464_v6 = vmul.f32 %v459_v3, %v459_v3  ;;  %s1473_s17 = smov [#allocation2]  }
  0x1c   : > { %s1396_s28 = sshll.u32 %s1473_s17, 4  ;;  %s1397_s28 = int_to_ptr.vmem [resolvable:$false] %s1396_s28 }
  0x1d   : > { %v466_v7 = vsel %vm465_vm3, %v464_v6, 0.0  ;;  %s1398_s21 = scalar_lea.vmem %s1397_s28, 512 }
  0x1e   : > { %v467_v8 = vrot.slane %v466_v7, 4 }
  0x20   : > { %v468_v9 = vadd.f32 %v467_v8, %v466_v7 }
  0x22   : > { %v469_v10 = vrot.slane %v468_v9, 2 }
  0x24   : > { %v470_v11 = vadd.f32 %v469_v10, %v468_v9 }
  0x26   : > { %v471_v12 = vrot.slane %v470_v11, 1 }
  0x28   : > { %v472_v13 = vadd.f32 %v471_v12, %v470_v11 }
  0x43   : > { %1382 = vset.pattern.permute.xlu0 %v1472_v1 }
  0x44   : > { %585 = vperm.xlu0 %1382, %v461_v4  }
  0x96   : > { %v489_v5 = vpop.trf.xlu0 }
  0x97   : > { %1288 = vmatmul.mubr.msk.f32.vlgmr.msra.gmra.mxu0 %vm505_vm2, %v489_v5 }
  0xbf   : > { %v586_v14 = vpop.permute.xlu0 %585 }
  0xc0   : > { %v588_v15 = vadd.f32 %v586_v14, %v472_v13  ;;  %v463_v14 = vld [vmem:[%s458_s29] sm:$0x3f]  ;;  %s430_s29 = sand.u32 1, %s1452_s14  }
  0xc1   : > { %s1238_s27 = sshll.u32 %s430_s29, 4  ;;  %s1703_s24 = scalar_lea.sflag [#allocation3], %s430_s29 }
  0xc2   : > { %s432_s30 = scalar_lea.vmem [#allocation2], %s1238_s27 }
 0x157   : > { %v579_v16 = vpop.f32.mrf.mxu0 }
 0x158   : > { %v589_v17 = vmul.f32 2.0, %v579_v16 }
 0x159   : > { %v1289_v18 = vpop.f32.mrf.mxu0 }
 0x15a   : > { %v590_v19 = vsub.f32 %v588_v15, %v589_v17  ;;  %v462_v17 = vld [vmem:[%s454_s11] sm:$0xf]  ;;  %s1107_s11 = sshll.u32 %s432_s30, 4  ;;  %s1694_s11 = int_to_ptr.vmem [resolvable:$true] %s1107_s11 }
 0x15b   : > { %v748_v18 = vld [vmem:[%s1753_s5] sm:$0xff]  ;;  %s1392_s16 = scalar_lea.vmem %s1694_s11, 256  ;;  %p1399_p1 = scmp.lt.s32.totalorder %s1694_s11, %s1397_s28 }
 0x15c   : > { %v594_v20 = vsel %vm593_vm4, %v590_v19, inf  ;;  %p1393_p12 = scmp.ne.s32.totalorder %s1694_s11, %s1392_s16  ;;  %p1400_p2 = scmp.lt.s32.totalorder %s1398_s21, %s1392_s16 }
 0x15d   : > { %v595_v21 = vrot.slane %v594_v20, 4 }
 0x15e   : > { %p1394_p13 = pnand %p1393_p12, %p1571_p4  ;;  %p1401_p3 = por %p1400_p2, %p1399_p1 }
 0x15f   : > { %v596_v22 = vmin.f32 %v594_v20, %v595_v21  ;;  %v752_v20 = vld [vmem:[%s1754_s6] sm:$0xff]  ;;  %v750_v21 = vld [vmem:[%s1753_s5 + $0x10] sm:$0xff] }
 0x160   : > { %p1395_p0 = pneg %p1394_p13 }
 0x161   : > { %v597_v23 = vrot.slane %v596_v22, 2 }
 0x162   : > { %p1402_p5 = pnand %p1401_p3, %p1395_p0 }
 0x163   : > { %v598_v25 = vmin.f32 %v596_v22, %v597_v23  ;;  %v751_v22 = vld [vmem:[%s1753_s5 + $0x18] sm:$0xff] }
 0x164   : > { %v963_v23 = vld [vmem:[%s1755_s7 + $0x18] sm:$0xff] }
 0x165   : > { %v599_v26 = vrot.slane %v598_v25, 1  ;;  %981 = vperm.xlu1 %1383, %v963_v23  }
 0x167   : > { %v600_v28 = vmin.f32 %v598_v25, %v599_v26  ;;  %v961_v25 = vld [vmem:[%s1755_s7 + $0x8] sm:$0xff]  ;;  %v960_v26 = vld [vmem:[%s1755_s7] sm:$0xff] }
 0x169   : > { %vm601_vm5 = vcmp.eq.f32.partialorder %v590_v19, %v600_v28  ;;  %v614_v44 = vadd.f32 1e-08, %v600_v28  ;;  %976 = vperm.xlu1 %1383, %v962_v24   ;;  %v995_v28 = vld [vmem:[%s1757_s9 + $0x8] sm:$0xff] }
 0x16a   : > { %v602_v29 = vsel %vm601_vm5, %v1608_v27, 8  ;;  %vm671_vm5 = vcmask 64512  }
 0x16b   : > { %v603_v30 = vsel %vm593_vm4, %v602_v29, 2147483647  ;;  %1384 = vrcp.f32 %v614_v44 }
 0x16c   : > { %v604_v31 = vrot.slane %v603_v30, 4 }
 0x16d   : > { %971 = vperm.xlu1 %1383, %v961_v25  }
 0x16e   : > { %vm605_vm6 = vcmp.lt.s32.totalorder %v603_v30, %v604_v31 }
 0x16f   : > { %v606_v32 = vsel %vm605_vm6, %v603_v30, %v604_v31  ;;  %vm871_vm6 = vcmask 1043456  }
 0x170   : > { %v607_v33 = vrot.slane %v606_v32, 2 }
 0x171   : > { %966 = vperm.xlu1 %1383, %v960_v26  }
 0x172   : > { %vm608_vm7 = vcmp.lt.s32.totalorder %v606_v32, %v607_v33 }
 0x173   : > { %v609_v34 = vsel %vm608_vm7, %v606_v32, %v607_v33  ;;  %vm858_vm7 = vcmask 31744   ;;  %v753_v33 = vld [vmem:[%s1754_s6 + $0x8] sm:$0xff] }
 0x174   : > { %v610_v35 = vrot.slane %v609_v34, 1 }
 0x176   : > { %vm611_vm8 = vcmp.lt.s32.totalorder %v609_v34, %v610_v35 }
 0x177   : > { %v612_v36 = vsel %vm611_vm8, %v609_v34, %v610_v35  ;;  %vm756_vm8 = vcmask 48128   ;;  %v754_v34 = vld [vmem:[%s1754_s6 + $0x10] sm:$0xff]  ;;  %v755_v35 = vld [vmem:[%s1754_s6 + $0x18] sm:$0xff] }
 0x178   : > { %vm613_vm9 = vcmp.eq.s32.totalorder %v1608_v27, %v612_v36  ;;  %v1385_v54 = vpop.eup %1384  ;;  %1297 = vmatprep.mubr.msk.f32.mxu0 %vm756_vm8, %v752_v20  ;;  %v992_v36 = vld [vmem:[%s1756_s8] sm:$0xff] }
 0x179   : > { %v619_v37 = vsel %vm613_vm9, inf, %v590_v19  ;;  %v617_v10 = vsel %vm613_vm9, %v1385_v54, 0.0  ;;  %v749_v19 = vld [vmem:[%s1753_s5 + $0x8] sm:$0xff]  ;;  %vm769_vm9 = vcmask 1045504  }
 0x17a   : > { %v620_v38 = vsel %vm593_vm4, %v619_v37, inf }
 0x17b   : > { %v621_v39 = vrot.slane %v620_v38, 4 }
 0x17d   : > { %v622_v40 = vmin.f32 %v620_v38, %v621_v39 }
 0x17f   : > { %v623_v41 = vrot.slane %v622_v40, 2 }
 0x181   : > { %v624_v42 = vmin.f32 %v622_v40, %v623_v41 }
 0x183   : > { %v625_v43 = vrot.slane %v624_v42, 1 }
 0x185   : > { %v626_v45 = vmin.f32 %v624_v42, %v625_v43 }
 0x187   : > { %vm627_vm10 = vcmp.eq.f32.partialorder %v619_v37, %v626_v45  ;;  %v640_v46 = vadd.f32 1e-08, %v626_v45 }
 0x188   : > { %v628_v47 = vsel %vm627_vm10, %v1608_v27, 8  ;;  %vm1006_vm10 = vcmask 261120  }
 0x189   : > { %v629_v48 = vsel %vm593_vm4, %v628_v47, 2147483647  ;;  %1386 = vrcp.f32 %v640_v46 }
 0x18a   : > { %v630_v49 = vrot.slane %v629_v48, 4 }
 0x18c   : > { %vm631_vm11 = vcmp.lt.s32.totalorder %v629_v48, %v630_v49 }
 0x18d   : > { %v632_v50 = vsel %vm631_vm11, %v629_v48, %v630_v49 }
 0x18e   : > { %v633_v51 = vrot.slane %v632_v50, 2 }
 0x190   : > { %vm634_vm12 = vcmp.lt.s32.totalorder %v632_v50, %v633_v51 }
 0x191   : > { %v635_v52 = vsel %vm634_vm12, %v632_v50, %v633_v51 }
 0x192   : > { %v636_v53 = vrot.slane %v635_v52, 1 }
 0x194   : > { %vm637_vm13 = vcmp.lt.s32.totalorder %v635_v52, %v636_v53 }
 0x195   : > { %v638_v55 = vsel %vm637_vm13, %v635_v52, %v636_v53 }
 0x196   : > { %v1387_v56 = vpop.eup %1386  ;;  %vm639_vm14 = vcmp.eq.s32.totalorder %v1608_v27, %v638_v55 }
 0x197   : > { %v645_v57 = vsel %vm639_vm14, inf, %v619_v37  ;;  %v644_v58 = vadd.f32 %v1387_v56, %v1385_v54  ;;  %v643_v13 = vsel %vm639_vm14, %v1387_v56, %v617_v10 }
 0x198   : > { %v646_v59 = vsel %vm593_vm4, %v645_v57, inf }
 0x199   : > { %v647_v60 = vrot.slane %v646_v59, 4 }
 0x19b   : > { %v648_v61 = vmin.f32 %v646_v59, %v647_v60 }
 0x19d   : > { %v649_v62 = vrot.slane %v648_v61, 2 }
 0x19f   : > { %v650_v63 = vmin.f32 %v648_v61, %v649_v62  ;;  %v993_v61 = vld [vmem:[%s1756_s8 + $0x8] sm:$0xff] }
 0x1a1   : > { %v651_v0 = vrot.slane %v650_v63, 1 }
 0x1a3   : > { %v652_v1 = vmin.f32 %v650_v63, %v651_v0 }
 0x1a5   : > { %vm653_vm15 = vcmp.eq.f32.partialorder %v645_v57, %v652_v1  ;;  %v666_v2 = vadd.f32 1e-08, %v652_v1 }
 0x1a6   : > { %v654_v3 = vsel %vm653_vm15, %v1608_v27, 8 }
 0x1a7   : > { %v655_v4 = vsel %vm593_vm4, %v654_v3, 2147483647  ;;  %1388 = vrcp.f32 %v666_v2 }
 0x1a8   : > { %v656_v5 = vrot.slane %v655_v4, 4 }
 0x1aa   : > { %vm657_vm0 = vcmp.lt.s32.totalorder %v655_v4, %v656_v5 }
 0x1ab   : > { %v658_v6 = vsel %vm657_vm0, %v655_v4, %v656_v5 }
 0x1ac   : > { %v659_v7 = vrot.slane %v658_v6, 2 }
 0x1ae   : > { %vm660_vm1 = vcmp.lt.s32.totalorder %v658_v6, %v659_v7 }
 0x1af   : > { %v661_v8 = vsel %vm660_vm1, %v658_v6, %v659_v7 }
 0x1b0   : > { %v662_v9 = vrot.slane %v661_v8, 1 }
 0x1b2   : > { %vm663_vm2 = vcmp.lt.s32.totalorder %v661_v8, %v662_v9 }
 0x1b3   : > { %v664_v11 = vsel %vm663_vm2, %v661_v8, %v662_v9 }
 0x1b4   : > { %v1389_v12 = vpop.eup %1388  ;;  %vm665_vm3 = vcmp.eq.s32.totalorder %v1608_v27, %v664_v11  ;;  %v994_v27 = vld [vmem:[%s1757_s9] sm:$0xff] }
 0x1b5   : > { %v669_v15 = vsel %vm665_vm3, %v1389_v12, %v643_v13  ;;  %v670_v16 = vadd.f32 %v1389_v12, %v644_v58  ;;  %998 = vperm.xlu1 %1383, %v994_v27  }
 0x1b6   : > { %1291 = vmatpush3.msra.mxu1 %v669_v15 }
 0x1b7   : > { %1293 = vmatmul.mubr.msk.f32.vlgmr.msra.gmra.mxu1 %vm671_vm5, %v463_v14  ;;  %1303 = vmatprep.subr.msk.mxu1 %vm871_vm6, %v462_v17  ;;  %1390 = vrcp.f32 %v670_v16 }
 0x1b8   : > { %1304 = vmatpush3.msk.msra.mxu1 %vm871_vm6, %v462_v17  ;;  %1305 = vmatprep.mubr.msk.f32.mxu1 %vm858_vm7, %v748_v18 }
 0x1b9   : > { %1003 = vperm.xlu1 %1383, %v995_v28  }
 0x1bb   : > { %1306 = vmatmul.mubr.msk.f32.vlgmr.msra.gmra.mxu1 %vm858_vm7, %v749_v19 }
 0x1bc   : > { %1308 = vmatprep.mubr.msk.f32.mxu1 %vm858_vm7, %v750_v21 }
 0x1bf   : > { %1309 = vmatmul.mubr.msk.f32.gmra.mxu1 %vm858_vm7, %v751_v22 }
 0x1c4   : > { %v1391_v29 = vpop.eup %1390 }
 0x1e0   : > { %v982_v37 = vpop.permute.xlu1 %981 }
 0x1e4   : > { %v977_v39 = vpop.permute.xlu1 %976 }
 0x1e8   : > { %v972_v44 = vpop.permute.xlu1 %971 }
 0x1ec   : > { %v967_v56 = vpop.permute.xlu1 %966 }
 0x230   : > { %v999_v62 = vpop.permute.xlu1 %998 }
 0x234   : > { %v1004_v63 = vpop.permute.xlu1 %1003 }
 0x277   : > { %v741_v30 = vpop.f32.mrf.mxu1 }
 0x278   : > { %v747_v31 = vmul.f32 %v1391_v29, %v741_v30 }
 0x279   : > { %v1294_v32 = vpop.f32.mrf.mxu1 }
 0x27a   : > { %1295 = vmatprep.subr.msk.mxu0 %vm769_vm9, %v747_v31 }
 0x27b   : > { %1296 = vmatpush3.msk.msra.mxu0 %vm769_vm9, %v747_v31  ;;  %v1307_v38 = vpop.f32.mrf.mxu1 }
 0x27c   : > { %1298 = vmatmul.mubr.msk.f32.vlgmr.msra.gmra.mxu0 %vm756_vm8, %v753_v33 }
 0x27d   : > { %1300 = vmatprep.mubr.msk.f32.mxu0 %vm756_vm8, %v754_v34  ;;  %v941_v40 = vpop.f32.mrf.mxu1 }
 0x27f   : > { %v1310_v43 = vpop.f32.mrf.mxu1 }
 0x280   : > { %1301 = vmatmul.mubr.msk.f32.gmra.mxu0 %vm756_vm8, %v755_v35 }
 0x281   : > { %1319 = vmatprep.mubr.msk.f32.mxu0 %vm1006_vm10, %v992_v36  ;;  %v951_v49 = vpop.f32.mrf.mxu1 }
 0x33c   : > { %v1299_v41 = vpop.f32.mrf.mxu0 }
 0x33d   : > { %v947_v46 = vadd.f32 %v1307_v38, %v1299_v41 }
 0x33e   : > { %v839_v42 = vpop.f32.mrf.mxu0 }
 0x33f   : > { %v942_v50 = vadd.f32 %v941_v40, %v839_v42  ;;  %v985_v53 = vadd.f32 %v972_v44, %v947_v46 }
 0x340   : > { %v1302_v45 = vpop.f32.mrf.mxu0 }
 0x341   : > { %v957_v47 = vadd.f32 %v1310_v43, %v1302_v45  ;;  %v984_v57 = vadd.f32 %v967_v56, %v942_v50  ;;  %v989_v59 = vmax.f32 %v985_v53, 0.0 }
 0x342   : > { %v849_v48 = vpop.f32.mrf.mxu0 }
 0x343   : > { %v987_v51 = vadd.f32 %v982_v37, %v957_v47  ;;  %v952_v52 = vadd.f32 %v951_v49, %v849_v48  ;;  %v988_v60 = vmax.f32 %v984_v57, 0.0 }
 0x345   : > { %v991_v54 = vmax.f32 %v987_v51, 0.0  ;;  %v986_v55 = vadd.f32 %v977_v39, %v952_v52 }
 0x347   : > { %v990_v58 = vmax.f32 %v986_v55, 0.0  ;;  %1311 = vmatprep.subr.mxu0 %v991_v54 }
 0x348   : > { %1312 = vmatpush3.msra.mxu0 %v991_v54 }
 0x349   : > { %1313 = vmatprep.subr.mxu0 %v990_v58 }
 0x34a   : > { %1314 = vmatpush3.msra.mxu0 %v990_v58 }
 0x34b   : > { %1315 = vmatprep.subr.mxu0 %v989_v59 }
 0x34c   : > { %1316 = vmatpush3.msra.mxu0 %v989_v59 }
 0x34d   : > { %1317 = vmatprep.subr.mxu0 %v988_v60 }
 0x34e   : > { %1318 = vmatpush3.msra.mxu0 %v988_v60 }
 0x34f   : > { %1320 = vmatmul.mubr.msk.f32.vlgmr.msra.gmra.mxu0 %vm1006_vm10, %v993_v61 }
 0x40f   : > { %v1321_v0 = vpop.f32.mrf.mxu0 }
 0x410   : > { %v1085_v1 = vadd.f32 %v1321_v0, %v1004_v63 }
 0x411   : > { %v1079_v2 = vpop.f32.mrf.mxu0 }
 0x412   : > { %v1089_v3 = vmax.f32 %v1085_v1, 0.0  ;;  %v1080_v4 = vadd.f32 %v1079_v2, %v999_v62 }
 0x414   : > { %1091 = vst.msk [vmem:[%s432_s30 + $0x8] sm:$0xff] %vm593_vm4, %v1089_v3  ;;  %v1088_v5 = vmax.f32 %v1080_v4, 0.0 }
 0x416   : > { %1090 = vst.msk [vmem:[%s432_s30] sm:$0xff] %vm593_vm4, %v1088_v5 }
 0x417   : > { %1405 = shalt.err (!%p1402_p5)
}
 0x418   : > { %s1406_s29 = scalar_lea.hbm %s1699_s22, 256  ;;  %s1410_s12 = scalar_lea.hbm %s1758_s10, 512 }
 0x419   : > { %p1407_p6 = scmp.ne.s32.totalorder %s1699_s22, %s1406_s29  ;;  %p1411_p10 = scmp.lt.s32.totalorder %s1699_s22, %s1758_s10 }
 0x41a   : > { %p1412_p11 = scmp.lt.s32.totalorder %s1410_s12, %s1406_s29 }
 0x41b   : > { %p1408_p7 = pnand %p1407_p6, %p1571_p4 }
 0x41c   : > { %p1413_p12 = por %p1412_p11, %p1411_p10 }
 0x41d   : > { %p1409_p9 = pneg %p1408_p7 }
 0x41f   : > { %p1414_p13 = pnand %p1413_p12, %p1409_p9 }
 0x421   : > { %1417 = shalt.err (!%p1414_p13)
}
 0x422   : > { %s1474_s16 = smov 128   ;;  %s1475_s17 = smov 8  }
 0x423   : > { %1322 = dma.vmem_to_hbm [thread:$0]  (%p1571_p4), %s1694_s11, 256, %s1699_s22, %s1703_s24, %s1474_s16, %s1474_s16, %s1475_s17  }
 0x424 PF: > { %p1328_p0 = scmp.ge.s32.totalorder %s1468_s18, 2  ;;  %s1122_s28 = sand.u32 1, %s1448_s13  }
 0x425   : > { %s1123_s21 = scalar_lea.sflag [#allocation3], %s1122_s28 }
 0x426   : > { %p1325_p1 = pnand %p1328_p0, %p1578_p8 }
 0x428   : > { %p1326_p2 = pneg %p1325_p1 }
 0x42a   : > { %1443 = dma.done.wait (%p1326_p2), %s1123_s21, 256  }
 0x42b   : > { %1445 = vsyncadd (%p1326_p2), %s1123_s21, 4294967040  ;;  %s23_s18 = sadd.s32 1, %s1468_s18   ;;  %s1765_s16 = sld [smem:[#allocation5_spill]] }
 0x42c   : > { %p20_p3 = scmp.ge.s32.totalorder %s23_s18, 4   ;;  %s1766_s17 = sld [smem:[#allocation6_spill]] }
 0x42d   : > { %s1767_s13 = smov %s1452_s14  ;;  %s1768_s14 = smov %s1456_s15 }
 0x42e   : > { %s1769_s15 = smov %s1584_s26  ;;  %22 = sbr.rel (!%p20_p3) target bundleno = 4 (0x4), region = 107 }
 0x433   :  { %1128 = vsyncpa [#allocation3], 1 }
 0x434   :  { %1130 = vsyncpa [#allocation3 + $0x1], 1 }

</bundles_post_ra>
